<compile_context>
chip_gen: v5e
topology: v5e:2x2
jax: 0.10.0
libtpu: 0.0.40
codegen_flags: <defaults>
</compile_context>

<pallas_src>
import functools
from typing import NamedTuple, Tuple

import jax
import jax.numpy as jnp
from jax.experimental import pallas as pl
from jax.experimental.pallas import tpu as pltpu

LANE = 128                              # vreg lane width (last dim)
_SUBLANE_MULT = {4: 8, 2: 16, 1: 32}    # batch-tile row multiple by itemsize


def _round_up(x, m):
    return (x + m - 1) // m * m


# ----------------------------------------------------------------------------- kernel


def _fused_mlp_kernel(*refs, n_layers, relu_flags, compute_dtype):
    """refs = (x_ref, w0_ref, b0_ref, w1_ref, b1_ref, ..., o_ref).

    Computes the full MLP for one batch tile. Intermediates never touch HBM;
    matmuls accumulate in f32, bias+ReLU run on the f32 accumulator, and the
    activation is cast back to compute_dtype only to feed the next MXU matmul.
    """
    x_ref = refs[0]
    o_ref = refs[-1]
    wb_refs = refs[1:-1]

    h = x_ref[...]
    for layer in range(n_layers):
        w = wb_refs[2 * layer][...]
        b = wb_refs[2 * layer + 1][...]
        acc = jnp.dot(h, w, preferred_element_type=jnp.float32)
        acc = acc + b                       # bias broadcast over batch rows (f32)
        if relu_flags[layer]:
            acc = jnp.maximum(acc, 0.0)
        h = acc if layer == n_layers - 1 else acc.astype(compute_dtype)
    o_ref[...] = h.astype(o_ref.dtype)


# ----------------------------------------------------------------------------- prep


class MLPMeta(NamedTuple):
    relu_flags: Tuple[bool, ...]
    din: int
    dout: int
    din_pad: int
    dout_pad: int
    layer_dims_pad: Tuple[Tuple[int, int], ...]
    compute_dtype: str


def prepare_mlp(params, *, compute_dtype=jnp.float32):
    """One-time prep: zero-pad feature dims to multiples of 128 and cast weights.

    params: list of (W [din, dout], b [1, dout], apply_relu) — unpadded f32.
    Returns (weights_tuple, biases_tuple, meta). Zero padding is exact: padded
    input columns are 0 and padded weight rows/cols are 0, so valid output
    columns are unchanged (ReLU preserves zeros). Biases stay f32 (added on the
    f32 accumulator).
    """
    cdt = jnp.dtype(compute_dtype)
    weights, biases, relu_flags, dims_pad = [], [], [], []
    for w, b, relu in params:
        din, dout = w.shape
        dpi, dpo = _round_up(din, LANE), _round_up(dout, LANE)
        wp = jnp.zeros((dpi, dpo), cdt).at[:din, :dout].set(jnp.asarray(w, cdt))
        b2 = jnp.asarray(b, jnp.float32).reshape(1, -1)
        bp = jnp.zeros((1, dpo), jnp.float32).at[:, : b2.shape[1]].set(b2)
        weights.append(wp)
        biases.append(bp)
        relu_flags.append(bool(relu))
        dims_pad.append((dpi, dpo))
    meta = MLPMeta(
        relu_flags=tuple(relu_flags),
        din=params[0][0].shape[0],
        dout=params[-1][0].shape[1],
        din_pad=dims_pad[0][0],
        dout_pad=dims_pad[-1][1],
        layer_dims_pad=tuple(dims_pad),
        compute_dtype=cdt.name,
    )
    return tuple(weights), tuple(biases), meta


# ----------------------------------------------------------------------------- forward


def _fused_mlp_forward_impl(x, weights, biases, *, meta, batch_tile,
                            single_buffer_weights):
    cdt = jnp.dtype(meta.compute_dtype)
    B, Din = x.shape
    assert Din == meta.din, (Din, meta.din)
    n_layers = len(meta.relu_flags)

    # ---- batch tiling: even split so padding waste is < one sublane group ----
    sub = _SUBLANE_MULT[cdt.itemsize]
    max_tile = max(sub, _round_up(min(batch_tile, B), sub))
    n_tiles = pl.cdiv(B, max_tile)
    TB = _round_up(pl.cdiv(B, n_tiles), sub)
    B_pad = _round_up(B, TB)
    grid = (B_pad // TB,)

    x_pad = jnp.zeros((B_pad, meta.din_pad), cdt).at[:B, :Din].set(x.astype(cdt))

    const_map = lambda i: (0, 0)
    # Constant block index across the batch axis -> weights/biases are DMA'd once
    # and stay VMEM-resident; single-buffer them so the dead second buffer does
    # not eat VMEM (important on v7x).
    wb_kwargs = dict(pipeline_mode=pl.Buffered(1)) if single_buffer_weights else {}

    kernel_args = [x_pad]
    in_specs = [pl.BlockSpec((TB, meta.din_pad), lambda i: (i, 0))]
    for w, b, (dpi, dpo) in zip(weights, biases, meta.layer_dims_pad):
        kernel_args.extend([w, b])
        in_specs.append(pl.BlockSpec((dpi, dpo), const_map, **wb_kwargs))
        in_specs.append(pl.BlockSpec((1, dpo), const_map, **wb_kwargs))

    # ---- VMEM budget (resident weights + double-buffered act tiles) ----
    out_itemsize = jnp.dtype(x.dtype).itemsize
    w_bytes = sum(dpi * dpo for dpi, dpo in meta.layer_dims_pad) * cdt.itemsize
    b_bytes = sum(dpo for _, dpo in meta.layer_dims_pad) * 4
    act_bytes = (2 * TB * meta.din_pad * cdt.itemsize
                 + 2 * TB * meta.dout_pad * out_itemsize)
    inter_bytes = 2 * TB * max(dpo for _, dpo in meta.layer_dims_pad) * 4
    needed = ((1 if single_buffer_weights else 2) * (w_bytes + b_bytes)
              + act_bytes + inter_bytes)
    # Never below the 32 MiB scoped default; cap at 128 MiB physical (v5e/v6e).
    vmem_limit = int(min(max(2 * needed + (4 << 20), 32 << 20), 128 << 20))

    flops = 2 * B_pad * sum(dpi * dpo for dpi, dpo in meta.layer_dims_pad)
    bytes_accessed = (B_pad * meta.din_pad * cdt.itemsize + w_bytes + b_bytes
                      + B_pad * meta.dout_pad * out_itemsize)

    kernel = functools.partial(_fused_mlp_kernel, n_layers=n_layers,
                               relu_flags=meta.relu_flags, compute_dtype=cdt)

    out_pad = pl.pallas_call(
        kernel,
        out_shape=jax.ShapeDtypeStruct((B_pad, meta.dout_pad), x.dtype),
        grid=grid,
        in_specs=in_specs,
        out_specs=pl.BlockSpec((TB, meta.dout_pad), lambda i: (i, 0)),
        compiler_params=pltpu.CompilerParams(
            dimension_semantics=("parallel",),   # shards batch tiles across TCs on v7x
            vmem_limit_bytes=vmem_limit,
        ),
        cost_estimate=pl.CostEstimate(flops=flops, transcendentals=0,
                                      bytes_accessed=bytes_accessed),
    )(*kernel_args)

    return out_pad[:B, : meta.dout]


_fused_mlp_forward_jit = jax.jit(
    _fused_mlp_forward_impl,
    static_argnames=("meta", "batch_tile", "single_buffer_weights"),
)

# Lazily decide whether single-buffered constant-index weight specs are supported
# by the installed JAX; fall back to default double buffering if not.
_SINGLE_BUFFER_OK = None if hasattr(pl, "Buffered") else False


def fused_mlp_forward(x, weights, biases, meta, *, batch_tile=256):
    """Jitted fused-MLP forward. `weights/biases/meta` come from prepare_mlp."""
    global _SINGLE_BUFFER_OK
    if _SINGLE_BUFFER_OK is None:
        try:
            out = _fused_mlp_forward_jit(x, weights, biases, meta=meta,
                                         batch_tile=batch_tile,
                                         single_buffer_weights=True)
            jax.block_until_ready(out)
            _SINGLE_BUFFER_OK = True
            return out
        except Exception:
            _SINGLE_BUFFER_OK = False
    return _fused_mlp_forward_jit(x, weights, biases, meta=meta,
                                  batch_tile=batch_tile,
                                  single_buffer_weights=_SINGLE_BUFFER_OK)


# ----------------------------------------------------------------------------- init


def orthogonal(key, rows, cols, dtype=jnp.float32):
    """Deterministic semi-orthogonal init matching nn.init.orthogonal_ semantics."""
    n, m = max(rows, cols), min(rows, cols)
    a = jax.random.normal(key, (n, m), dtype=jnp.float32)
    q, r = jnp.linalg.qr(a)
    d = jnp.diag(r)
    q = q * jnp.where(d == 0, 1.0, jnp.sign(d))
    if rows < cols:
        q = q.T
    return q[:rows, :cols].astype(dtype)


def init_mlp_params(key, input_dim, hidden_dim, output_dim, hidden_depth):
    """Mirrors mlp(...) + weight_init: orthogonal weights, zero biases.

    Returns list of (W [in, out], b [1, out], apply_relu).
    """
    if hidden_depth == 0:
        dims = [(input_dim, output_dim, False)]
    else:
        dims = [(input_dim, hidden_dim, True)]
        for _ in range(hidden_depth - 1):
            dims.append((hidden_dim, hidden_dim, True))
        dims.append((hidden_dim, output_dim, False))

    params = []
    keys = jax.random.split(key, len(dims))
    for k, (din, dout, relu) in zip(keys, dims):
        w_torch = orthogonal(k, dout, din)  # PyTorch layout (out, in)
        w = w_torch.T                       # kernel layout (in, out)
        b = jnp.zeros((1, dout), jnp.float32)
        params.append((w, b, relu))
    return params


def _reference_forward(x, params):
    h = x
    for w, b, relu in params:
        h = h @ w + b
        if relu:
            h = jnp.maximum(h, 0.0)
    return h


# ----------------------------------------------------------------------------- main


if __name__ == "__main__":
    key = jax.random.PRNGKey(0)
    kx, kp, kx2, kp2 = jax.random.split(key, 4)

    # MLP(input_dim=32, hidden_dim=32, output_dim=16, hidden_depth=2), batch=8.
    batch, input_dim, hidden_dim, output_dim, hidden_depth = 8, 32, 32, 16, 2
    x = jax.random.normal(kx, (batch, input_dim), jnp.float32)
    params = init_mlp_params(kp, input_dim, hidden_dim, output_dim, hidden_depth)

    # One-time prep (padding / casting happens here, not per forward call).
    w_f32, b_f32, meta_f32 = prepare_mlp(params, compute_dtype=jnp.float32)
    out = jax.block_until_ready(fused_mlp_forward(x, w_f32, b_f32, meta_f32))
    ref = _reference_forward(x, params)
    assert out.shape == (batch, output_dim)
    assert jnp.allclose(out, ref, atol=1e-5, rtol=1e-5)

    # bf16 MXU path (v5e/v6e/v7x native) with f32 accumulation; looser tolerance.
    w_bf, b_bf, meta_bf = prepare_mlp(params, compute_dtype=jnp.bfloat16)
    out_bf = jax.block_until_ready(fused_mlp_forward(x, w_bf, b_bf, meta_bf))
    assert out_bf.dtype == x.dtype
    assert jnp.allclose(out_bf, ref, atol=5e-2, rtol=5e-2)

    # hidden_depth=0 (single Linear).
    params0 = init_mlp_params(kp2, input_dim, hidden_dim, output_dim, 0)
    w0, b0, meta0 = prepare_mlp(params0)
    out0 = jax.block_until_ready(fused_mlp_forward(x, w0, b0, meta0))
    assert jnp.allclose(out0, _reference_forward(x, params0), atol=1e-5, rtol=1e-5)

    # Batch needing tiling: B=300 -> even split TB=152, B_pad=304, grid=(2,).
    xb = jax.random.normal(kx2, (300, input_dim), jnp.float32)
    outb = jax.block_until_ready(fused_mlp_forward(xb, w_f32, b_f32, meta_f32))
    assert outb.shape == (300, output_dim)
    assert jnp.allclose(outb, _reference_forward(xb, params), atol=1e-5, rtol=1e-5)

    print("KERNEL_OK")
</pallas_src>

<mosaic_0001>
module attributes {stable_mosaic.version = 11 : i64} {
  func.func @_fused_mlp_kernel(%arg0: i32, %arg1: memref<8x128xf32, #tpu.memory_space<vmem>>, %arg2: memref<128x128xf32, #tpu.memory_space<vmem>>, %arg3: memref<1x128xf32, #tpu.memory_space<vmem>>, %arg4: memref<128x128xf32, #tpu.memory_space<vmem>>, %arg5: memref<1x128xf32, #tpu.memory_space<vmem>>, %arg6: memref<128x128xf32, #tpu.memory_space<vmem>>, %arg7: memref<1x128xf32, #tpu.memory_space<vmem>>, %arg8: memref<8x128xf32, #tpu.memory_space<vmem>>) attributes {dimension_semantics = [#tpu.dimension_semantics<parallel>], iteration_bounds = array<i64: 1>, scalar_prefetch = 0 : i64, scratch_operands = 0 : i64, tpu.core_type = #tpu.core_type<tc>, window_params = [{transform_indices = @transform_0, window_bounds = array<i64: 8, 128>}, {pipeline_mode = #tpu.pipeline_mode<synchronous>, transform_indices = @transform_1, window_bounds = array<i64: 128, 128>}, {pipeline_mode = #tpu.pipeline_mode<synchronous>, transform_indices = @transform_2, window_bounds = array<i64: 1, 128>}, {pipeline_mode = #tpu.pipeline_mode<synchronous>, transform_indices = @transform_3, window_bounds = array<i64: 128, 128>}, {pipeline_mode = #tpu.pipeline_mode<synchronous>, transform_indices = @transform_4, window_bounds = array<i64: 1, 128>}, {pipeline_mode = #tpu.pipeline_mode<synchronous>, transform_indices = @transform_5, window_bounds = array<i64: 128, 128>}, {pipeline_mode = #tpu.pipeline_mode<synchronous>, transform_indices = @transform_6, window_bounds = array<i64: 1, 128>}, {transform_indices = @transform_7, window_bounds = array<i64: 8, 128>}]} {
    %c0 = arith.constant 0 : index
    %c0_0 = arith.constant 0 : index
    %0 = vector.load %arg1[%c0, %c0_0] : memref<8x128xf32, #tpu.memory_space<vmem>>, vector<8x128xf32>
    %c0_1 = arith.constant 0 : index
    %c0_2 = arith.constant 0 : index
    %1 = vector.load %arg2[%c0_1, %c0_2] : memref<128x128xf32, #tpu.memory_space<vmem>>, vector<128x128xf32>
    %c0_3 = arith.constant 0 : index
    %c0_4 = arith.constant 0 : index
    %2 = vector.load %arg3[%c0_3, %c0_4] : memref<1x128xf32, #tpu.memory_space<vmem>>, vector<1x128xf32>
    %cst = arith.constant dense<0.000000e+00> : vector<8x128xf32>
    %3 = tpu.matmul %0, %1, %cst {dimension_numbers = #tpu.dot_dimension_numbers<[1], [0], [0], [1], [0, 0, 1, 1], [], []>} : vector<8x128xf32>, vector<128x128xf32>, vector<8x128xf32> -> vector<8x128xf32>
    %4 = vector.broadcast %2 : vector<1x128xf32> to vector<8x128xf32>
    %5 = arith.addf %3, %4 : vector<8x128xf32>
    %cst_5 = arith.constant 0.000000e+00 : f32
    %6 = vector.broadcast %cst_5 : f32 to vector<8x128xf32>
    %7 = arith.maximumf %5, %6 : vector<8x128xf32>
    %c0_6 = arith.constant 0 : index
    %c0_7 = arith.constant 0 : index
    %8 = vector.load %arg4[%c0_6, %c0_7] : memref<128x128xf32, #tpu.memory_space<vmem>>, vector<128x128xf32>
    %c0_8 = arith.constant 0 : index
    %c0_9 = arith.constant 0 : index
    %9 = vector.load %arg5[%c0_8, %c0_9] : memref<1x128xf32, #tpu.memory_space<vmem>>, vector<1x128xf32>
    %cst_10 = arith.constant dense<0.000000e+00> : vector<8x128xf32>
    %10 = tpu.matmul %7, %8, %cst_10 {dimension_numbers = #tpu.dot_dimension_numbers<[1], [0], [0], [1], [0, 0, 1, 1], [], []>} : vector<8x128xf32>, vector<128x128xf32>, vector<8x128xf32> -> vector<8x128xf32>
    %11 = vector.broadcast %9 : vector<1x128xf32> to vector<8x128xf32>
    %12 = arith.addf %10, %11 : vector<8x128xf32>
    %cst_11 = arith.constant 0.000000e+00 : f32
    %13 = vector.broadcast %cst_11 : f32 to vector<8x128xf32>
    %14 = arith.maximumf %12, %13 : vector<8x128xf32>
    %c0_12 = arith.constant 0 : index
    %c0_13 = arith.constant 0 : index
    %15 = vector.load %arg6[%c0_12, %c0_13] : memref<128x128xf32, #tpu.memory_space<vmem>>, vector<128x128xf32>
    %c0_14 = arith.constant 0 : index
    %c0_15 = arith.constant 0 : index
    %16 = vector.load %arg7[%c0_14, %c0_15] : memref<1x128xf32, #tpu.memory_space<vmem>>, vector<1x128xf32>
    %cst_16 = arith.constant dense<0.000000e+00> : vector<8x128xf32>
    %17 = tpu.matmul %14, %15, %cst_16 {dimension_numbers = #tpu.dot_dimension_numbers<[1], [0], [0], [1], [0, 0, 1, 1], [], []>} : vector<8x128xf32>, vector<128x128xf32>, vector<8x128xf32> -> vector<8x128xf32>
    %18 = vector.broadcast %16 : vector<1x128xf32> to vector<8x128xf32>
    %19 = arith.addf %17, %18 : vector<8x128xf32>
    %c0_17 = arith.constant 0 : index
    %c0_18 = arith.constant 0 : index
    %20 = vector.load %arg8[%c0_17, %c0_18] : memref<8x128xf32, #tpu.memory_space<vmem>>, vector<8x128xf32>
    tpu.vector_store %arg8[%c0_17, %c0_18], %19 {strides = array<i32>} : memref<8x128xf32, #tpu.memory_space<vmem>>, vector<8x128xf32>,
    return
  }
  func.func @transform_0(%arg0: i32) -> (i32, i32) {
    %c0_i32 = arith.constant 0 : i32
    %c0_i32_0 = arith.constant 0 : i32
    return %arg0, %c0_i32 : i32, i32
  }
  func.func @transform_1(%arg0: i32) -> (i32, i32) {
    %c0_i32 = arith.constant 0 : i32
    %c0_i32_0 = arith.constant 0 : i32
    %c0_i32_1 = arith.constant 0 : i32
    return %c0_i32, %c0_i32_0 : i32, i32
  }
  func.func @transform_2(%arg0: i32) -> (i32, i32) {
    %c0_i32 = arith.constant 0 : i32
    %c0_i32_0 = arith.constant 0 : i32
    %c0_i32_1 = arith.constant 0 : i32
    return %c0_i32, %c0_i32_0 : i32, i32
  }
  func.func @transform_3(%arg0: i32) -> (i32, i32) {
    %c0_i32 = arith.constant 0 : i32
    %c0_i32_0 = arith.constant 0 : i32
    %c0_i32_1 = arith.constant 0 : i32
    return %c0_i32, %c0_i32_0 : i32, i32
  }
  func.func @transform_4(%arg0: i32) -> (i32, i32) {
    %c0_i32 = arith.constant 0 : i32
    %c0_i32_0 = arith.constant 0 : i32
    %c0_i32_1 = arith.constant 0 : i32
    return %c0_i32, %c0_i32_0 : i32, i32
  }
  func.func @transform_5(%arg0: i32) -> (i32, i32) {
    %c0_i32 = arith.constant 0 : i32
    %c0_i32_0 = arith.constant 0 : i32
    %c0_i32_1 = arith.constant 0 : i32
    return %c0_i32, %c0_i32_0 : i32, i32
  }
  func.func @transform_6(%arg0: i32) -> (i32, i32) {
    %c0_i32 = arith.constant 0 : i32
    %c0_i32_0 = arith.constant 0 : i32
    %c0_i32_1 = arith.constant 0 : i32
    return %c0_i32, %c0_i32_0 : i32, i32
  }
  func.func @transform_7(%arg0: i32) -> (i32, i32) {
    %c0_i32 = arith.constant 0 : i32
    %c0_i32_0 = arith.constant 0 : i32
    return %arg0, %c0_i32 : i32, i32
  }
}

module attributes {stable_mosaic.version = 11 : i64} {
  func.func @_fused_mlp_kernel(%arg0: i32, %arg1: memref<8x128xf32, #tpu.memory_space<vmem>>, %arg2: memref<128x128xf32, #tpu.memory_space<vmem>>, %arg3: memref<1x128xf32, #tpu.memory_space<vmem>>, %arg4: memref<128x128xf32, #tpu.memory_space<vmem>>, %arg5: memref<1x128xf32, #tpu.memory_space<vmem>>, %arg6: memref<128x128xf32, #tpu.memory_space<vmem>>, %arg7: memref<1x128xf32, #tpu.memory_space<vmem>>, %arg8: memref<8x128xf32, #tpu.memory_space<vmem>>) attributes {dimension_semantics = [#tpu.dimension_semantics<parallel>], iteration_bounds = array<i64: 1>, scalar_prefetch = 0 : i64, scratch_operands = 0 : i64, tpu.core_type = #tpu.core_type<tc>, window_params = [{transform_indices = @transform_0, window_bounds = array<i64: 8, 128>}, {pipeline_mode = #tpu.pipeline_mode<synchronous>, transform_indices = @transform_1, window_bounds = array<i64: 128, 128>}, {pipeline_mode = #tpu.pipeline_mode<synchronous>, transform_indices = @transform_2, window_bounds = array<i64: 1, 128>}, {pipeline_mode = #tpu.pipeline_mode<synchronous>, transform_indices = @transform_3, window_bounds = array<i64: 128, 128>}, {pipeline_mode = #tpu.pipeline_mode<synchronous>, transform_indices = @transform_4, window_bounds = array<i64: 1, 128>}, {pipeline_mode = #tpu.pipeline_mode<synchronous>, transform_indices = @transform_5, window_bounds = array<i64: 128, 128>}, {pipeline_mode = #tpu.pipeline_mode<synchronous>, transform_indices = @transform_6, window_bounds = array<i64: 1, 128>}, {transform_indices = @transform_7, window_bounds = array<i64: 8, 128>}]} {
    %c0 = arith.constant 0 : index
    %c0_0 = arith.constant 0 : index
    %0 = vector.load %arg1[%c0, %c0_0] : memref<8x128xf32, #tpu.memory_space<vmem>>, vector<8x128xf32>
    %c0_1 = arith.constant 0 : index
    %c0_2 = arith.constant 0 : index
    %1 = vector.load %arg2[%c0_1, %c0_2] : memref<128x128xf32, #tpu.memory_space<vmem>>, vector<128x128xf32>
    %c0_3 = arith.constant 0 : index
    %c0_4 = arith.constant 0 : index
    %2 = vector.load %arg3[%c0_3, %c0_4] : memref<1x128xf32, #tpu.memory_space<vmem>>, vector<1x128xf32>
    %cst = arith.constant dense<0.000000e+00> : vector<8x128xf32>
    %3 = tpu.matmul %0, %1, %cst {dimension_numbers = #tpu.dot_dimension_numbers<[1], [0], [0], [1], [0, 0, 1, 1], [], []>} : vector<8x128xf32>, vector<128x128xf32>, vector<8x128xf32> -> vector<8x128xf32>
    %4 = vector.broadcast %2 : vector<1x128xf32> to vector<8x128xf32>
    %5 = arith.addf %3, %4 : vector<8x128xf32>
    %cst_5 = arith.constant 0.000000e+00 : f32
    %6 = vector.broadcast %cst_5 : f32 to vector<8x128xf32>
    %7 = arith.maximumf %5, %6 : vector<8x128xf32>
    %c0_6 = arith.constant 0 : index
    %c0_7 = arith.constant 0 : index
    %8 = vector.load %arg4[%c0_6, %c0_7] : memref<128x128xf32, #tpu.memory_space<vmem>>, vector<128x128xf32>
    %c0_8 = arith.constant 0 : index
    %c0_9 = arith.constant 0 : index
    %9 = vector.load %arg5[%c0_8, %c0_9] : memref<1x128xf32, #tpu.memory_space<vmem>>, vector<1x128xf32>
    %cst_10 = arith.constant dense<0.000000e+00> : vector<8x128xf32>
    %10 = tpu.matmul %7, %8, %cst_10 {dimension_numbers = #tpu.dot_dimension_numbers<[1], [0], [0], [1], [0, 0, 1, 1], [], []>} : vector<8x128xf32>, vector<128x128xf32>, vector<8x128xf32> -> vector<8x128xf32>
    %11 = vector.broadcast %9 : vector<1x128xf32> to vector<8x128xf32>
    %12 = arith.addf %10, %11 : vector<8x128xf32>
    %cst_11 = arith.constant 0.000000e+00 : f32
    %13 = vector.broadcast %cst_11 : f32 to vector<8x128xf32>
    %14 = arith.maximumf %12, %13 : vector<8x128xf32>
    %c0_12 = arith.constant 0 : index
    %c0_13 = arith.constant 0 : index
    %15 = vector.load %arg6[%c0_12, %c0_13] : memref<128x128xf32, #tpu.memory_space<vmem>>, vector<128x128xf32>
    %c0_14 = arith.constant 0 : index
    %c0_15 = arith.constant 0 : index
    %16 = vector.load %arg7[%c0_14, %c0_15] : memref<1x128xf32, #tpu.memory_space<vmem>>, vector<1x128xf32>
    %cst_16 = arith.constant dense<0.000000e+00> : vector<8x128xf32>
    %17 = tpu.matmul %14, %15, %cst_16 {dimension_numbers = #tpu.dot_dimension_numbers<[1], [0], [0], [1], [0, 0, 1, 1], [], []>} : vector<8x128xf32>, vector<128x128xf32>, vector<8x128xf32> -> vector<8x128xf32>
    %18 = vector.broadcast %16 : vector<1x128xf32> to vector<8x128xf32>
    %19 = arith.addf %17, %18 : vector<8x128xf32>
    %c0_17 = arith.constant 0 : index
    %c0_18 = arith.constant 0 : index
    %20 = vector.load %arg8[%c0_17, %c0_18] : memref<8x128xf32, #tpu.memory_space<vmem>>, vector<8x128xf32>
    tpu.vector_store %arg8[%c0_17, %c0_18], %19 {strides = array<i32>} : memref<8x128xf32, #tpu.memory_space<vmem>>, vector<8x128xf32>,
    return
  }
  func.func @transform_0(%arg0: i32) -> (i32, i32) {
    %c0_i32 = arith.constant 0 : i32
    %c0_i32_0 = arith.constant 0 : i32
    return %arg0, %c0_i32 : i32, i32
  }
  func.func @transform_1(%arg0: i32) -> (i32, i32) {
    %c0_i32 = arith.constant 0 : i32
    %c0_i32_0 = arith.constant 0 : i32
    %c0_i32_1 = arith.constant 0 : i32
    return %c0_i32, %c0_i32_0 : i32, i32
  }
  func.func @transform_2(%arg0: i32) -> (i32, i32) {
    %c0_i32 = arith.constant 0 : i32
    %c0_i32_0 = arith.constant 0 : i32
    %c0_i32_1 = arith.constant 0 : i32
    return %c0_i32, %c0_i32_0 : i32, i32
  }
  func.func @transform_3(%arg0: i32) -> (i32, i32) {
    %c0_i32 = arith.constant 0 : i32
    %c0_i32_0 = arith.constant 0 : i32
    %c0_i32_1 = arith.constant 0 : i32
    return %c0_i32, %c0_i32_0 : i32, i32
  }
  func.func @transform_4(%arg0: i32) -> (i32, i32) {
    %c0_i32 = arith.constant 0 : i32
    %c0_i32_0 = arith.constant 0 : i32
    %c0_i32_1 = arith.constant 0 : i32
    return %c0_i32, %c0_i32_0 : i32, i32
  }
  func.func @transform_5(%arg0: i32) -> (i32, i32) {
    %c0_i32 = arith.constant 0 : i32
    %c0_i32_0 = arith.constant 0 : i32
    %c0_i32_1 = arith.constant 0 : i32
    return %c0_i32, %c0_i32_0 : i32, i32
  }
  func.func @transform_6(%arg0: i32) -> (i32, i32) {
    %c0_i32 = arith.constant 0 : i32
    %c0_i32_0 = arith.constant 0 : i32
    %c0_i32_1 = arith.constant 0 : i32
    return %c0_i32, %c0_i32_0 : i32, i32
  }
  func.func @transform_7(%arg0: i32) -> (i32, i32) {
    %c0_i32 = arith.constant 0 : i32
    %c0_i32_0 = arith.constant 0 : i32
    return %arg0, %c0_i32 : i32, i32
  }
}

</mosaic_0001>

<bundles_post_ra>
// kernel: _fused_mlp_forward_impl.1
= control target key start
LH: loop header
LB: loop body
LE: loop exit
PB: predicated region body
PF: predicated region fallthrough
CT: control target
= control target key end

     0   :  { %12 = vsyncpa [#allocation3], 0  ;;  %s397_s0 = inlined_call_operand.vmem [shape: f32[8,128], index: 0, kind: input, shape index: {}]   ;;  %s398_s1 = inlined_call_operand.hbm [shape: f32[128,128], index: 1, kind: input, shape index: {}]   ;;  %s399_s2 = inlined_call_operand.vmem [shape: f32[1,128], index: 2, kind: input, shape index: {}]   ;;  %s400_s3 = inlined_call_operand.hbm [shape: f32[128,128], index: 3, kind: input, shape index: {}]   ;;  %s401_s4 = inlined_call_operand.vmem [shape: f32[1,128], index: 4, kind: input, shape index: {}]   ;;  %s402_s5 = inlined_call_operand.hbm [shape: f32[128,128], index: 5, kind: input, shape index: {}]   ;;  %s403_s6 = inlined_call_operand.vmem [shape: f32[1,128], index: 6, kind: input, shape index: {}]   ;;  %s404_s7 = inlined_call_operand.hbm [shape: f32[8,128], index: 7, kind: output, shape index: {}]  }
   0x1   :  { %13 = vsyncpa [#allocation6], 0 }
   0x2   :  { %14 = vsyncpa [#allocation4], 0  ;;  %s36_s26 = sshll.u32 %s400_s3, 4  ;;  %s327_s27 = smov [#allocation5]   ;;  %s37_s26 = int_to_ptr.hbm [resolvable:$true] %s36_s26 }
   0x3   :  { %s38_s28 = sshll.u32 %s327_s27, 4  ;;  %s21_s8 = sshll.u32 %s398_s1, 4  ;;  %s39_s28 = int_to_ptr.vmem [resolvable:$true] %s38_s28  ;;  %s22_s8 = int_to_ptr.hbm [resolvable:$true] %s21_s8 }
   0x4   :  { %s328_s9 = smov 128   ;;  %s329_s10 = smov 8  }
   0x5   :  { %44 = dma.hbm_to_vmem [thread:$0]  %s37_s26, 2048, %s39_s28, [#allocation6], %s328_s9, %s328_s9, %s329_s10  }
   0x6   :  { %s330_s11 = smov [#allocation2]   ;;  %s51_s15 = sshll.u32 %s402_s5, 4  ;;  %s52_s15 = int_to_ptr.hbm [resolvable:$true] %s51_s15 }
   0x7   :  { %s23_s12 = sshll.u32 %s330_s11, 4  ;;  %s331_s3 = smov [#allocation7]   ;;  %s24_s12 = int_to_ptr.vmem [resolvable:$true] %s23_s12 }
   0x8   :  { %29 = dma.hbm_to_vmem [thread:$0]  %s22_s8, 2048, %s24_s12, [#allocation3], %s328_s9, %s328_s9, %s329_s10  }
   0x9   :  { %s53_s16 = sshll.u32 %s331_s3, 4  ;;  %s54_s16 = int_to_ptr.vmem [resolvable:$true] %s53_s16 }
   0xa   :  { %59 = dma.hbm_to_vmem [thread:$0]  %s52_s15, 2048, %s54_s16, [#allocation6], %s328_s9, %s328_s9, %s329_s10  }
   0xb   :  { %321 = dma.done.wait [#allocation3], 2048  }
   0xc   :  { %322 = vsyncadd [#allocation3], 4294965248 }
   0xd   :  { %323 = dma.done.wait [#allocation6], 4096  }
   0xe   :  { %324 = vsyncadd [#allocation6], 4294963200  ;;  %v90_v0 = vld [vmem:[#allocation2 + $0x78] sm:$0xff]  ;;  %v89_v1 = vld [vmem:[#allocation2 + $0x70] sm:$0xff]  ;;  %s332_s21 = smov [#allocation8]   ;;  %s205_s25 = sshll.u32 %s404_s7, 4  ;;  %s206_s25 = int_to_ptr.hbm [resolvable:$true] %s205_s25 }
   0xf   :  { %95 = vmatpush.msra.mxu0 %v90_v0  ;;  %v88_v2 = vld [vmem:[#allocation2 + $0x68] sm:$0xff]  ;;  %v87_v3 = vld [vmem:[#allocation2 + $0x60] sm:$0xff]  ;;  %v131_v4 = vld [vmem:[#allocation5 + $0x78] sm:$0xff]  ;;  %s203_s22 = sshll.u32 %s332_s21, 4  ;;  %s204_s22 = int_to_ptr.vmem [resolvable:$true] %s203_s22 }
  0x10   :  { %v86_v5 = vld [vmem:[#allocation2 + $0x58] sm:$0xff]  ;;  %136 = vmatpush.msra.mxu1 %v131_v4  ;;  %v130_v6 = vld [vmem:[#allocation5 + $0x70] sm:$0xff]  ;;  %v129_v7 = vld [vmem:[#allocation5 + $0x68] sm:$0xff] }
  0x11   :  { %96 = vmatpush.msra.mxu0 %v89_v1  ;;  %v85_v8 = vld [vmem:[#allocation2 + $0x50] sm:$0xff]  ;;  %v128_v9 = vld [vmem:[#allocation5 + $0x60] sm:$0xff]  ;;  %v84_v10 = vld [vmem:[#allocation2 + $0x48] sm:$0xff] }
  0x12   :  { %137 = vmatpush.msra.mxu1 %v130_v6  ;;  %v127_v11 = vld [vmem:[#allocation5 + $0x58] sm:$0xff]  ;;  %v83_v12 = vld [vmem:[#allocation2 + $0x40] sm:$0xff]  ;;  %v126_v13 = vld [vmem:[#allocation5 + $0x50] sm:$0xff] }
  0x13   :  { %97 = vmatpush.msra.mxu0 %v88_v2  ;;  %v82_v14 = vld [vmem:[#allocation2 + $0x38] sm:$0xff]  ;;  %v125_v15 = vld [vmem:[#allocation5 + $0x48] sm:$0xff]  ;;  %v81_v16 = vld [vmem:[#allocation2 + $0x30] sm:$0xff] }
  0x14   :  { %138 = vmatpush.msra.mxu1 %v129_v7  ;;  %v124_v17 = vld [vmem:[#allocation5 + $0x40] sm:$0xff]  ;;  %v80_v18 = vld [vmem:[#allocation2 + $0x28] sm:$0xff]  ;;  %v123_v19 = vld [vmem:[#allocation5 + $0x38] sm:$0xff] }
  0x15   :  { %98 = vmatpush.msra.mxu0 %v87_v3  ;;  %v79_v20 = vld [vmem:[#allocation2 + $0x20] sm:$0xff]  ;;  %v122_v21 = vld [vmem:[#allocation5 + $0x30] sm:$0xff]  ;;  %v78_v22 = vld [vmem:[#allocation2 + $0x18] sm:$0xff] }
  0x16   :  { %139 = vmatpush.msra.mxu1 %v128_v9  ;;  %v121_v23 = vld [vmem:[#allocation5 + $0x28] sm:$0xff]  ;;  %v77_v24 = vld [vmem:[#allocation2 + $0x10] sm:$0xff]  ;;  %v120_v25 = vld [vmem:[#allocation5 + $0x20] sm:$0xff] }
  0x17   :  { %99 = vmatpush.msra.mxu0 %v86_v5  ;;  %v76_v26 = vld [vmem:[#allocation2 + $0x8] sm:$0xff]  ;;  %v119_v27 = vld [vmem:[#allocation5 + $0x18] sm:$0xff]  ;;  %v75_v28 = vld [vmem:[#allocation2] sm:$0xff] }
  0x18   :  { %140 = vmatpush.msra.mxu1 %v127_v11  ;;  %v74_v29 = vld [vmem:[%s397_s0] sm:$0xff]  ;;  %v118_v30 = vld [vmem:[#allocation5 + $0x10] sm:$0xff]  ;;  %v117_v31 = vld [vmem:[#allocation5 + $0x8] sm:$0xff] }
  0x19   :  { %100 = vmatpush.msra.mxu0 %v85_v8  ;;  %v116_v32 = vld [vmem:[#allocation5] sm:$0xff]  ;;  %v172_v33 = vld [vmem:[#allocation7 + $0x78] sm:$0xff]  ;;  %v171_v34 = vld [vmem:[#allocation7 + $0x70] sm:$0xff] }
  0x1a   :  { %141 = vmatpush.msra.mxu1 %v126_v13  ;;  %177 = vmatpush.msra.mxu2 %v172_v33  ;;  %v170_v35 = vld [vmem:[#allocation7 + $0x68] sm:$0xff]  ;;  %v169_v36 = vld [vmem:[#allocation7 + $0x60] sm:$0xff]  ;;  %v168_v37 = vld [vmem:[#allocation7 + $0x58] sm:$0xff] }
  0x1b   :  { %101 = vmatpush.msra.mxu0 %v84_v10  ;;  %v167_v38 = vld [vmem:[#allocation7 + $0x50] sm:$0xff]  ;;  %v166_v39 = vld [vmem:[#allocation7 + $0x48] sm:$0xff]  ;;  %v165_v40 = vld [vmem:[#allocation7 + $0x40] sm:$0xff] }
  0x1c   :  { %142 = vmatpush.msra.mxu1 %v125_v15  ;;  %178 = vmatpush.msra.mxu2 %v171_v34  ;;  %v164_v41 = vld [vmem:[#allocation7 + $0x38] sm:$0xff]  ;;  %v163_v42 = vld [vmem:[#allocation7 + $0x30] sm:$0xff]  ;;  %v162_v43 = vld [vmem:[#allocation7 + $0x28] sm:$0xff] }
  0x1d   :  { %102 = vmatpush.msra.mxu0 %v83_v12  ;;  %v161_v44 = vld [vmem:[#allocation7 + $0x20] sm:$0xff]  ;;  %v160_v45 = vld [vmem:[#allocation7 + $0x18] sm:$0xff]  ;;  %v159_v50 = vld [vmem:[#allocation7 + $0x10] sm:$0xff] }
  0x1e   :  { %143 = vmatpush.msra.mxu1 %v124_v17  ;;  %179 = vmatpush.msra.mxu2 %v170_v35  ;;  %v222_v46 = vld [vmem:[%s399_s2] ss:$0 sm:$0xff]  ;;  %v158_v51 = vld [vmem:[#allocation7 + $0x8] sm:$0xff] }
  0x1f   :  { %103 = vmatpush.msra.mxu0 %v82_v14  ;;  %v157_v52 = vld [vmem:[#allocation7] sm:$0xff] }
  0x20   :  { %144 = vmatpush.msra.mxu1 %v123_v19  ;;  %180 = vmatpush.msra.mxu2 %v169_v36  ;;  %v223_v53 = vld [vmem:[%s401_s4] ss:$0 sm:$0xff] }
  0x21   :  { %104 = vmatpush.msra.mxu0 %v81_v16  ;;  %v224_v57 = vld [vmem:[%s403_s6] ss:$0 sm:$0xff] }
  0x22   :  { %145 = vmatpush.msra.mxu1 %v122_v21  ;;  %181 = vmatpush.msra.mxu2 %v168_v37 }
  0x23   :  { %105 = vmatpush.msra.mxu0 %v80_v18 }
  0x24   :  { %146 = vmatpush.msra.mxu1 %v121_v23  ;;  %182 = vmatpush.msra.mxu2 %v167_v38 }
  0x25   :  { %106 = vmatpush.msra.mxu0 %v79_v20 }
  0x26   :  { %147 = vmatpush.msra.mxu1 %v120_v25  ;;  %183 = vmatpush.msra.mxu2 %v166_v39 }
  0x27   :  { %107 = vmatpush.msra.mxu0 %v78_v22 }
  0x28   :  { %148 = vmatpush.msra.mxu1 %v119_v27  ;;  %184 = vmatpush.msra.mxu2 %v165_v40 }
  0x29   :  { %108 = vmatpush.msra.mxu0 %v77_v24 }
  0x2a   :  { %149 = vmatpush.msra.mxu1 %v118_v30  ;;  %185 = vmatpush.msra.mxu2 %v164_v41 }
  0x2b   :  { %109 = vmatpush.msra.mxu0 %v76_v26 }
  0x2c   :  { %150 = vmatpush.msra.mxu1 %v117_v31  ;;  %186 = vmatpush.msra.mxu2 %v163_v42 }
  0x2d   :  { %110 = vmatpush.msra.mxu0 %v75_v28 }
  0x2e   :  { %111 = vmatmul.f32.vlgmr.msra.gmra.mxu0 %v74_v29  ;;  %151 = vmatpush.msra.mxu1 %v116_v32 }
  0x2f   :  { %187 = vmatpush.msra.mxu2 %v162_v43 }
  0x31   :  { %188 = vmatpush.msra.mxu2 %v161_v44 }
  0x33   :  { %189 = vmatpush.msra.mxu2 %v160_v45 }
  0x35   :  { %190 = vmatpush.msra.mxu2 %v159_v50 }
  0x37   :  { %191 = vmatpush.msra.mxu2 %v158_v51 }
  0x39   :  { %192 = vmatpush.msra.mxu2 %v157_v52 }
  0xab   :  { %v112_v47 = vpop.f32.mrf.mxu0 }
  0xac   :  { %v113_v48 = vadd.f32 %v222_v46, %v112_v47 }
  0xae   :  { %v115_v49 = vmax.f32 %v113_v48, 0.0 }
  0xb0   :  { %152 = vmatmul.f32.vlgmr.msra.gmra.mxu1 %v115_v49 }
 0x12d   :  { %v153_v54 = vpop.f32.mrf.mxu1 }
 0x12e   :  { %v154_v55 = vadd.f32 %v223_v53, %v153_v54 }
 0x130   :  { %v156_v56 = vmax.f32 %v154_v55, 0.0 }
 0x132   :  { %193 = vmatmul.f32.vlgmr.msra.gmra.mxu2 %v156_v56 }
 0x1b5   :  { %v194_v58 = vpop.f32.mrf.mxu2 }
 0x1b6   :  { %v195_v59 = vadd.f32 %v224_v57, %v194_v58 }
 0x1b8   :  { %197 = vst [vmem:[#allocation8] sm:$0xff] %v195_v59 }
 0x1b9   :  { %208 = dma.vmem_to_hbm [thread:$0]  %s204_s22, 128, %s206_s25, [#allocation4]  }
 0x1ba   :  { %325 = dma.done.wait [#allocation4], 128  }
 0x1bb   :  { %326 = vsyncadd [#allocation4], 4294967168 }
 0x1bc   :  { %213 = vsyncpa [#allocation3], 1 }
 0x1bd   :  { %214 = vsyncpa [#allocation6], 1 }
 0x1be   :  { %215 = vsyncpa [#allocation4], 1 }

// kernel: _fused_mlp_forward_impl.1
= control target key start
LH: loop header
LB: loop body
LE: loop exit
PB: predicated region body
PF: predicated region fallthrough
CT: control target
= control target key end

     0   :  { %12 = vsyncpa [#allocation3], 0  ;;  %s397_s0 = inlined_call_operand.vmem [shape: f32[8,128], index: 0, kind: input, shape index: {}]   ;;  %s398_s1 = inlined_call_operand.hbm [shape: f32[128,128], index: 1, kind: input, shape index: {}]   ;;  %s399_s2 = inlined_call_operand.vmem [shape: f32[1,128], index: 2, kind: input, shape index: {}]   ;;  %s400_s3 = inlined_call_operand.hbm [shape: f32[128,128], index: 3, kind: input, shape index: {}]   ;;  %s401_s4 = inlined_call_operand.vmem [shape: f32[1,128], index: 4, kind: input, shape index: {}]   ;;  %s402_s5 = inlined_call_operand.hbm [shape: f32[128,128], index: 5, kind: input, shape index: {}]   ;;  %s403_s6 = inlined_call_operand.vmem [shape: f32[1,128], index: 6, kind: input, shape index: {}]   ;;  %s404_s7 = inlined_call_operand.hbm [shape: f32[8,128], index: 7, kind: output, shape index: {}]  }
   0x1   :  { %13 = vsyncpa [#allocation6], 0 }
   0x2   :  { %14 = vsyncpa [#allocation4], 0  ;;  %s36_s26 = sshll.u32 %s400_s3, 4  ;;  %s327_s27 = smov [#allocation5]   ;;  %s37_s26 = int_to_ptr.hbm [resolvable:$true] %s36_s26 }
   0x3   :  { %s38_s28 = sshll.u32 %s327_s27, 4  ;;  %s21_s8 = sshll.u32 %s398_s1, 4  ;;  %s39_s28 = int_to_ptr.vmem [resolvable:$true] %s38_s28  ;;  %s22_s8 = int_to_ptr.hbm [resolvable:$true] %s21_s8 }
   0x4   :  { %s328_s9 = smov 128   ;;  %s329_s10 = smov 8  }
   0x5   :  { %44 = dma.hbm_to_vmem [thread:$0]  %s37_s26, 2048, %s39_s28, [#allocation6], %s328_s9, %s328_s9, %s329_s10  }
   0x6   :  { %s330_s11 = smov [#allocation2]   ;;  %s51_s15 = sshll.u32 %s402_s5, 4  ;;  %s52_s15 = int_to_ptr.hbm [resolvable:$true] %s51_s15 }
   0x7   :  { %s23_s12 = sshll.u32 %s330_s11, 4  ;;  %s331_s3 = smov [#allocation7]   ;;  %s24_s12 = int_to_ptr.vmem [resolvable:$true] %s23_s12 }
   0x8   :  { %29 = dma.hbm_to_vmem [thread:$0]  %s22_s8, 2048, %s24_s12, [#allocation3], %s328_s9, %s328_s9, %s329_s10  }
   0x9   :  { %s53_s16 = sshll.u32 %s331_s3, 4  ;;  %s54_s16 = int_to_ptr.vmem [resolvable:$true] %s53_s16 }
   0xa   :  { %59 = dma.hbm_to_vmem [thread:$0]  %s52_s15, 2048, %s54_s16, [#allocation6], %s328_s9, %s328_s9, %s329_s10  }
   0xb   :  { %321 = dma.done.wait [#allocation3], 2048  }
   0xc   :  { %322 = vsyncadd [#allocation3], 4294965248 }
   0xd   :  { %323 = dma.done.wait [#allocation6], 4096  }
   0xe   :  { %324 = vsyncadd [#allocation6], 4294963200  ;;  %v90_v0 = vld [vmem:[#allocation2 + $0x78] sm:$0xff]  ;;  %v89_v1 = vld [vmem:[#allocation2 + $0x70] sm:$0xff]  ;;  %s332_s21 = smov [#allocation8]   ;;  %s205_s25 = sshll.u32 %s404_s7, 4  ;;  %s206_s25 = int_to_ptr.hbm [resolvable:$true] %s205_s25 }
   0xf   :  { %95 = vmatpush.msra.mxu0 %v90_v0  ;;  %v88_v2 = vld [vmem:[#allocation2 + $0x68] sm:$0xff]  ;;  %v87_v3 = vld [vmem:[#allocation2 + $0x60] sm:$0xff]  ;;  %v131_v4 = vld [vmem:[#allocation5 + $0x78] sm:$0xff]  ;;  %s203_s22 = sshll.u32 %s332_s21, 4  ;;  %s204_s22 = int_to_ptr.vmem [resolvable:$true] %s203_s22 }
  0x10   :  { %v86_v5 = vld [vmem:[#allocation2 + $0x58] sm:$0xff]  ;;  %136 = vmatpush.msra.mxu1 %v131_v4  ;;  %v130_v6 = vld [vmem:[#allocation5 + $0x70] sm:$0xff]  ;;  %v129_v7 = vld [vmem:[#allocation5 + $0x68] sm:$0xff] }
  0x11   :  { %96 = vmatpush.msra.mxu0 %v89_v1  ;;  %v85_v8 = vld [vmem:[#allocation2 + $0x50] sm:$0xff]  ;;  %v128_v9 = vld [vmem:[#allocation5 + $0x60] sm:$0xff]  ;;  %v84_v10 = vld [vmem:[#allocation2 + $0x48] sm:$0xff] }
  0x12   :  { %137 = vmatpush.msra.mxu1 %v130_v6  ;;  %v127_v11 = vld [vmem:[#allocation5 + $0x58] sm:$0xff]  ;;  %v83_v12 = vld [vmem:[#allocation2 + $0x40] sm:$0xff]  ;;  %v126_v13 = vld [vmem:[#allocation5 + $0x50] sm:$0xff] }
  0x13   :  { %97 = vmatpush.msra.mxu0 %v88_v2  ;;  %v82_v14 = vld [vmem:[#allocation2 + $0x38] sm:$0xff]  ;;  %v125_v15 = vld [vmem:[#allocation5 + $0x48] sm:$0xff]  ;;  %v81_v16 = vld [vmem:[#allocation2 + $0x30] sm:$0xff] }
  0x14   :  { %138 = vmatpush.msra.mxu1 %v129_v7  ;;  %v124_v17 = vld [vmem:[#allocation5 + $0x40] sm:$0xff]  ;;  %v80_v18 = vld [vmem:[#allocation2 + $0x28] sm:$0xff]  ;;  %v123_v19 = vld [vmem:[#allocation5 + $0x38] sm:$0xff] }
  0x15   :  { %98 = vmatpush.msra.mxu0 %v87_v3  ;;  %v79_v20 = vld [vmem:[#allocation2 + $0x20] sm:$0xff]  ;;  %v122_v21 = vld [vmem:[#allocation5 + $0x30] sm:$0xff]  ;;  %v78_v22 = vld [vmem:[#allocation2 + $0x18] sm:$0xff] }
  0x16   :  { %139 = vmatpush.msra.mxu1 %v128_v9  ;;  %v121_v23 = vld [vmem:[#allocation5 + $0x28] sm:$0xff]  ;;  %v77_v24 = vld [vmem:[#allocation2 + $0x10] sm:$0xff]  ;;  %v120_v25 = vld [vmem:[#allocation5 + $0x20] sm:$0xff] }
  0x17   :  { %99 = vmatpush.msra.mxu0 %v86_v5  ;;  %v76_v26 = vld [vmem:[#allocation2 + $0x8] sm:$0xff]  ;;  %v119_v27 = vld [vmem:[#allocation5 + $0x18] sm:$0xff]  ;;  %v75_v28 = vld [vmem:[#allocation2] sm:$0xff] }
  0x18   :  { %140 = vmatpush.msra.mxu1 %v127_v11  ;;  %v74_v29 = vld [vmem:[%s397_s0] sm:$0xff]  ;;  %v118_v30 = vld [vmem:[#allocation5 + $0x10] sm:$0xff]  ;;  %v117_v31 = vld [vmem:[#allocation5 + $0x8] sm:$0xff] }
  0x19   :  { %100 = vmatpush.msra.mxu0 %v85_v8  ;;  %v116_v32 = vld [vmem:[#allocation5] sm:$0xff]  ;;  %v172_v33 = vld [vmem:[#allocation7 + $0x78] sm:$0xff]  ;;  %v171_v34 = vld [vmem:[#allocation7 + $0x70] sm:$0xff] }
  0x1a   :  { %141 = vmatpush.msra.mxu1 %v126_v13  ;;  %177 = vmatpush.msra.mxu2 %v172_v33  ;;  %v170_v35 = vld [vmem:[#allocation7 + $0x68] sm:$0xff]  ;;  %v169_v36 = vld [vmem:[#allocation7 + $0x60] sm:$0xff]  ;;  %v168_v37 = vld [vmem:[#allocation7 + $0x58] sm:$0xff] }
  0x1b   :  { %101 = vmatpush.msra.mxu0 %v84_v10  ;;  %v167_v38 = vld [vmem:[#allocation7 + $0x50] sm:$0xff]  ;;  %v166_v39 = vld [vmem:[#allocation7 + $0x48] sm:$0xff]  ;;  %v165_v40 = vld [vmem:[#allocation7 + $0x40] sm:$0xff] }
  0x1c   :  { %142 = vmatpush.msra.mxu1 %v125_v15  ;;  %178 = vmatpush.msra.mxu2 %v171_v34  ;;  %v164_v41 = vld [vmem:[#allocation7 + $0x38] sm:$0xff]  ;;  %v163_v42 = vld [vmem:[#allocation7 + $0x30] sm:$0xff]  ;;  %v162_v43 = vld [vmem:[#allocation7 + $0x28] sm:$0xff] }
  0x1d   :  { %102 = vmatpush.msra.mxu0 %v83_v12  ;;  %v161_v44 = vld [vmem:[#allocation7 + $0x20] sm:$0xff]  ;;  %v160_v45 = vld [vmem:[#allocation7 + $0x18] sm:$0xff]  ;;  %v159_v50 = vld [vmem:[#allocation7 + $0x10] sm:$0xff] }
  0x1e   :  { %143 = vmatpush.msra.mxu1 %v124_v17  ;;  %179 = vmatpush.msra.mxu2 %v170_v35  ;;  %v222_v46 = vld [vmem:[%s399_s2] ss:$0 sm:$0xff]  ;;  %v158_v51 = vld [vmem:[#allocation7 + $0x8] sm:$0xff] }
  0x1f   :  { %103 = vmatpush.msra.mxu0 %v82_v14  ;;  %v157_v52 = vld [vmem:[#allocation7] sm:$0xff] }
  0x20   :  { %144 = vmatpush.msra.mxu1 %v123_v19  ;;  %180 = vmatpush.msra.mxu2 %v169_v36  ;;  %v223_v53 = vld [vmem:[%s401_s4] ss:$0 sm:$0xff] }
  0x21   :  { %104 = vmatpush.msra.mxu0 %v81_v16  ;;  %v224_v57 = vld [vmem:[%s403_s6] ss:$0 sm:$0xff] }
  0x22   :  { %145 = vmatpush.msra.mxu1 %v122_v21  ;;  %181 = vmatpush.msra.mxu2 %v168_v37 }
  0x23   :  { %105 = vmatpush.msra.mxu0 %v80_v18 }
  0x24   :  { %146 = vmatpush.msra.mxu1 %v121_v23  ;;  %182 = vmatpush.msra.mxu2 %v167_v38 }
  0x25   :  { %106 = vmatpush.msra.mxu0 %v79_v20 }
  0x26   :  { %147 = vmatpush.msra.mxu1 %v120_v25  ;;  %183 = vmatpush.msra.mxu2 %v166_v39 }
  0x27   :  { %107 = vmatpush.msra.mxu0 %v78_v22 }
  0x28   :  { %148 = vmatpush.msra.mxu1 %v119_v27  ;;  %184 = vmatpush.msra.mxu2 %v165_v40 }
  0x29   :  { %108 = vmatpush.msra.mxu0 %v77_v24 }
  0x2a   :  { %149 = vmatpush.msra.mxu1 %v118_v30  ;;  %185 = vmatpush.msra.mxu2 %v164_v41 }
  0x2b   :  { %109 = vmatpush.msra.mxu0 %v76_v26 }
  0x2c   :  { %150 = vmatpush.msra.mxu1 %v117_v31  ;;  %186 = vmatpush.msra.mxu2 %v163_v42 }
  0x2d   :  { %110 = vmatpush.msra.mxu0 %v75_v28 }
  0x2e   :  { %111 = vmatmul.f32.vlgmr.msra.gmra.mxu0 %v74_v29  ;;  %151 = vmatpush.msra.mxu1 %v116_v32 }
  0x2f   :  { %187 = vmatpush.msra.mxu2 %v162_v43 }
  0x31   :  { %188 = vmatpush.msra.mxu2 %v161_v44 }
  0x33   :  { %189 = vmatpush.msra.mxu2 %v160_v45 }
  0x35   :  { %190 = vmatpush.msra.mxu2 %v159_v50 }
  0x37   :  { %191 = vmatpush.msra.mxu2 %v158_v51 }
  0x39   :  { %192 = vmatpush.msra.mxu2 %v157_v52 }
  0xab   :  { %v112_v47 = vpop.f32.mrf.mxu0 }
  0xac   :  { %v113_v48 = vadd.f32 %v222_v46, %v112_v47 }
  0xae   :  { %v115_v49 = vmax.f32 %v113_v48, 0.0 }
  0xb0   :  { %152 = vmatmul.f32.vlgmr.msra.gmra.mxu1 %v115_v49 }
 0x12d   :  { %v153_v54 = vpop.f32.mrf.mxu1 }
 0x12e   :  { %v154_v55 = vadd.f32 %v223_v53, %v153_v54 }
 0x130   :  { %v156_v56 = vmax.f32 %v154_v55, 0.0 }
 0x132   :  { %193 = vmatmul.f32.vlgmr.msra.gmra.mxu2 %v156_v56 }
 0x1b5   :  { %v194_v58 = vpop.f32.mrf.mxu2 }
 0x1b6   :  { %v195_v59 = vadd.f32 %v224_v57, %v194_v58 }
 0x1b8   :  { %197 = vst [vmem:[#allocation8] sm:$0xff] %v195_v59 }
 0x1b9   :  { %208 = dma.vmem_to_hbm [thread:$0]  %s204_s22, 128, %s206_s25, [#allocation4]  }
 0x1ba   :  { %325 = dma.done.wait [#allocation4], 128  }
 0x1bb   :  { %326 = vsyncadd [#allocation4], 4294967168 }
 0x1bc   :  { %213 = vsyncpa [#allocation3], 1 }
 0x1bd   :  { %214 = vsyncpa [#allocation6], 1 }
 0x1be   :  { %215 = vsyncpa [#allocation4], 1 }

</bundles_post_ra>
